<compile_context>
chip_gen: v5e
topology: v5e:2x2
jax: 0.10.0
libtpu: 0.0.40
codegen_flags: <defaults>
</compile_context>

<pallas_src>
from functools import partial

import numpy as np
import jax
import jax.numpy as jnp
from jax import lax
from jax.experimental import pallas as pl
from jax.experimental.pallas import tpu as pltpu


# ----------------------------------------------------------------------------
# Minimal nltk.Tree replacement (only what HierarchicalLLLoss.__init__ needs)
# ----------------------------------------------------------------------------
class Tree:
    def __init__(self, label, children):
        self._label = label
        self._children = list(children)

    def label(self):
        return self._label

    def __getitem__(self, index):
        if isinstance(index, int):
            return self._children[index]
        node = self
        for i in index:
            node = node[i]
        return node

    def treepositions(self, order="preorder"):
        positions = []
        if order == "preorder":
            positions.append(())
        for i, child in enumerate(self._children):
            if isinstance(child, Tree):
                positions.extend((i,) + p for p in child.treepositions(order))
            else:
                positions.append((i,))
        return positions


def get_label(node):
    if isinstance(node, Tree):
        return node.label()
    return node


# ----------------------------------------------------------------------------
# Parameter construction (faithful port of HierarchicalLLLoss.__init__, numpy)
# ----------------------------------------------------------------------------
def build_hxe_params(hierarchy, leaf_classes, intern_classes, weights_tree):
    assert hierarchy.treepositions() == weights_tree.treepositions()
    positions_nodes_dic = {get_label(hierarchy[p]): p for p in hierarchy.treepositions()}
    num_leaf = len(leaf_classes)
    num_intern = len(intern_classes)
    positions_leaves = [positions_nodes_dic[c] for c in leaf_classes]
    positions_intern_nodes = [positions_nodes_dic[c] for c in intern_classes]
    positions_edges = hierarchy.treepositions()[1:]
    index_map_leaves = {positions_leaves[i]: i for i in range(len(positions_leaves))}
    index_map_edges = {positions_edges[i]: i for i in range(len(positions_edges))}
    edges_from_leaf = [
        [index_map_edges[pos[:i]] for i in range(len(pos), 0, -1)] for pos in positions_leaves
    ]
    num_edges = max(len(p) for p in edges_from_leaf)

    def get_leaf_positions(position):
        node = hierarchy[position]
        if isinstance(node, Tree):
            return node.treepositions("leaves")
        return [()]

    leaf_indices = [
        [index_map_leaves[position + leaf] for leaf in get_leaf_positions(position)]
        for position in positions_edges
    ]

    onehot_den = np.zeros((num_leaf + num_intern, num_leaf, num_edges), np.float32)
    onehot_num = np.zeros_like(onehot_den)
    weights = np.zeros((num_leaf + num_intern, num_edges), np.float32)

    for i in range(num_leaf):
        for j, k in enumerate(edges_from_leaf[i]):
            onehot_num[i, leaf_indices[k], j] = 1.0
            weights[i, j] = float(get_label(weights_tree[positions_edges[k]]))
        for j, k in enumerate(edges_from_leaf[i][1:]):
            onehot_den[i, leaf_indices[k], j] = 1.0
        onehot_den[i, :, j + 1] = 1.0
    for i in range(num_intern):
        pos = positions_intern_nodes[i]
        leaves_from_node = [index_map_leaves[pos + leaf] for leaf in get_leaf_positions(pos)]
        onehot_den[num_leaf + i] = np.clip(onehot_den[leaves_from_node].sum(0), None, 1.0)
        onehot_num[num_leaf + i] = np.clip(onehot_num[leaves_from_node].sum(0), None, 1.0)
        weights[num_leaf + i] = weights[leaves_from_node].mean(0)
    return onehot_num, onehot_den, weights


# ----------------------------------------------------------------------------
# Padded table packing
#   tab : (T, 2*E8, C128) bf16  fused [onehot_num ; onehot_den], transposed (edges, classes)
#   w2d : (T, E8)          f32  per-class edge weights (2-D, lane-major)
# ----------------------------------------------------------------------------
def _round_up(x, m):
    return -(-x // m) * m


def build_padded_tables(onehot_num, onehot_den, weights):
    onehot_num = np.asarray(onehot_num, np.float32)
    onehot_den = np.asarray(onehot_den, np.float32)
    weights = np.asarray(weights, np.float32)
    T, C, E = onehot_num.shape
    E8 = _round_up(max(E, 1), 8)        # edges on sublanes (small depth -> cheap padding)
    C128 = _round_up(max(C, 1), 128)    # leaf classes on lanes

    tab = np.zeros((T, 2 * E8, C128), np.float32)
    tab[:, :E, :C] = np.transpose(onehot_num, (0, 2, 1))          # rows [0, E)     : num
    tab[:, E8:E8 + E, :C] = np.transpose(onehot_den, (0, 2, 1))   # rows [E8, E8+E) : den
    w2d = np.zeros((T, E8), np.float32)
    w2d[:, :E] = weights

    # 0/1 onehots are exact in bf16 -> halves table HBM/VMEM footprint; weights stay f32.
    return jnp.asarray(tab, jnp.bfloat16), jnp.asarray(w2d, jnp.float32), E8, C128


# ----------------------------------------------------------------------------
# Shared per-group math (fully vectorized over G samples)
# ----------------------------------------------------------------------------
def _edge_nll_sum(gath, xg, wg, e8):
    """gath: (G, 2*E8, C128) bf16 fused one-hot rows; xg: (G, C128) f32 probs;
    wg: (G, E8) f32 edge weights.  Returns sum over the G samples of
    sum_e w[e] * -log(num[e]/den[e]) with num==0 edges contributing 0."""
    xb = xg[:, None, :]                                       # (G, 1, C128)
    # Select instead of cast+multiply: one-hots are exactly 0/1, so this is bit-exact in
    # f32 and never runs bf16 arithmetic on the VPU (matters on v5e) nor a per-group cast.
    sel = jnp.where(gath != 0, xb, 0.0)                       # (G, 2*E8, C128) f32
    nd = jnp.sum(sel, axis=-1)                                # (G, 2*E8)  (XLU lane reduce)
    num = nd[:, :e8]                                          # (G, E8)
    den = nd[:, e8:]
    mask = num != 0.0
    # -log(num/den) == log(den) - log(num) : EUP logs, no divide on the VALU path.
    val = jnp.where(
        mask,
        jnp.log(jnp.where(mask, den, 1.0)) - jnp.log(jnp.where(mask, num, 1.0)),
        0.0,
    )
    return jnp.sum(wg * val)


# ----------------------------------------------------------------------------
# Pallas kernels
# ----------------------------------------------------------------------------
def _hxe_resident_kernel(tgt_ref, x_ref, w_ref, tab_ref, out_ref, gath_ref,
                         *, tb, e8, group):
    """Fast path: table resident in VMEM; TB samples per grid step, vectorized in
    groups of `group` samples (only the data-dependent row gather stays serial)."""
    i = pl.program_id(0)
    base = i * tb
    n_groups = tb // group

    def group_body(g, acc):
        goff = pl.multiple_of(g * group, group)
        # Gather `group` target table rows into a tiny VMEM scratch (bf16, 1 packed
        # vreg-row each for shallow hierarchies); fully unrolled static loop.
        for j in range(group):
            t = tgt_ref[base + goff + j]                       # SMEM scalar read
            gath_ref[j] = tab_ref[t]                           # dynamic VMEM slice
        gath = gath_ref[...]                                   # (group, 2*E8, C128) bf16
        xg = x_ref[pl.ds(goff, group), :]                      # (group, C128) f32
        wg = w_ref[pl.ds(goff, group), :]                      # (group, E8) f32
        return acc + _edge_nll_sum(gath, xg, wg, e8)

    tile_sum = lax.fori_loop(0, n_groups, group_body, jnp.float32(0.0))
    out_ref[...] = jnp.full((1, 1, 1), tile_sum, jnp.float32)


def _hxe_stream_kernel(tgt_ref, x_ref, w_ref, tab_hbm, out_ref, buf, sem, *, tb, e8):
    """Fallback: table stays in HBM; per-sample row DMAs are manually double-buffered
    and overlapped with compute; TB samples per grid step, per-tile partial sum out."""
    i = pl.program_id(0)
    base = i * tb

    def fetch(b, slot):
        t = tgt_ref[base + b]
        pltpu.make_async_copy(tab_hbm.at[t], buf.at[slot], sem.at[slot]).start()

    fetch(0, 0)                                                # prime slot 0

    def body(b, acc):
        slot = b & 1
        pltpu.make_async_copy(tab_hbm.at[0], buf.at[slot], sem.at[slot]).wait()

        @pl.when(b + 1 < tb)
        def _():
            fetch(b + 1, 1 - slot)                             # overlap next row's DMA

        gath = buf[pl.ds(slot, 1)]                             # (1, 2*E8, C128) bf16
        xg = x_ref[pl.ds(b, 1), :]                             # (1, C128)
        wg = w_ref[pl.ds(b, 1), :]                             # (1, E8)
        return acc + _edge_nll_sum(gath, xg, wg, e8)

    tile_sum = lax.fori_loop(0, tb, body, jnp.float32(0.0))
    out_ref[...] = jnp.full((1, 1, 1), tile_sum, jnp.float32)


# ----------------------------------------------------------------------------
# Wrapper
# ----------------------------------------------------------------------------
def hierarchical_ll_loss(inputs, target, onehot_num, onehot_den, weights,
                         *, batch_tile=None, group=8, force_gather=False):
    """inputs: (B, C) class probabilities; target: (B,) int class index (leaf or intern)."""
    inputs = jnp.asarray(inputs, jnp.float32)
    B, C = inputs.shape
    T = int(onehot_num.shape[0])
    tab, w2d, E8, C128 = build_padded_tables(onehot_num, onehot_den, weights)

    # VMEM budget (v5e/v6e: 128 MiB, v7x: 64 MiB); conservative default if query fails.
    vmem_cap = 64 * 1024 * 1024
    try:
        vmem_cap = int(pltpu.get_tpu_info().vmem_capacity_bytes)
    except Exception:
        pass

    if batch_tile is None:
        # >=2 grid tiles whenever B allows it (keeps both v7x TensorCores busy via the
        # "parallel" batch axis; no cost on single-TC v5e/v6e), large tiles otherwise to
        # amortize the ~0.35us per-grid-step pipeline overhead.
        batch_tile = min(512, _round_up(max(-(-B // 2), 1), 8))
    TB = _round_up(min(batch_tile, _round_up(B, 8)), 8)
    if TB % group != 0:
        group = 8
    B_pad = _round_up(B, TB)
    num_tiles = B_pad // TB

    # Zero-padded samples (all-zero probability rows) give num == 0 -> masked -> exactly 0.
    x_p = jnp.zeros((B_pad, C128), jnp.float32).at[:B, :C].set(inputs)
    t_p = jnp.zeros((B_pad,), jnp.int32).at[:B].set(jnp.asarray(target, jnp.int32))
    # Per-sample edge weights gathered JAX-side (tiny), tiled per grid step: avoids any
    # in-kernel weight gather and the old (T, E8, 1) lane-padding VMEM blow-up.
    w_g = jnp.take(w2d, t_p, axis=0)                           # (B_pad, E8) f32

    # Resident-table budget.  The table BlockSpec has a constant index_map (the pipeline
    # elides the redundant re-copies) but we still budget 2x for its double-buffer
    # allocation.  TODO(synk): pipeline_mode=pl.Buffered(1) would halve this on JAX
    # versions that accept single-buffered constant-index blocks (biggest win on v7x).
    tab_bytes = T * (2 * E8) * C128 * 2                        # bf16
    x_tile_bytes = 2 * TB * C128 * 4
    w_tile_bytes = 2 * TB * max(E8, 128) * 4
    gath_bytes = group * (2 * E8) * C128 * 2
    resident_need = 2 * tab_bytes + x_tile_bytes + w_tile_bytes + gath_bytes + (2 << 20)
    use_resident = (not force_gather) and resident_need <= int(0.75 * vmem_cap)

    out_shape = jax.ShapeDtypeStruct((num_tiles, 1, 1), jnp.float32)

    if use_resident:
        grid_spec = pltpu.PrefetchScalarGridSpec(
            num_scalar_prefetch=1,
            grid=(num_tiles,),
            in_specs=[
                pl.BlockSpec((TB, C128), lambda i, t: (i, 0)),
                pl.BlockSpec((TB, E8), lambda i, t: (i, 0)),
                pl.BlockSpec((T, 2 * E8, C128), lambda i, t: (0, 0, 0)),   # resident table
            ],
            out_specs=pl.BlockSpec((1, 1, 1), lambda i, t: (i, 0, 0)),
            scratch_shapes=[pltpu.VMEM((group, 2 * E8, C128), jnp.bfloat16)],
        )
        vmem_limit = int(min(max(resident_need + (8 << 20), 32 << 20), int(0.95 * vmem_cap)))
        partial_sums = pl.pallas_call(
            partial(_hxe_resident_kernel, tb=TB, e8=E8, group=group),
            out_shape=out_shape,
            grid_spec=grid_spec,
            compiler_params=pltpu.CompilerParams(
                dimension_semantics=("parallel",),
                vmem_limit_bytes=vmem_limit,
            ),
        )(t_p, x_p, w_g, tab)
    else:
        grid_spec = pltpu.PrefetchScalarGridSpec(
            num_scalar_prefetch=1,
            grid=(num_tiles,),
            in_specs=[
                pl.BlockSpec((TB, C128), lambda i, t: (i, 0)),
                pl.BlockSpec((TB, E8), lambda i, t: (i, 0)),
                pl.BlockSpec(memory_space=pl.ANY),                         # table in HBM
            ],
            out_specs=pl.BlockSpec((1, 1, 1), lambda i, t: (i, 0, 0)),
            scratch_shapes=[
                pltpu.VMEM((2, 2 * E8, C128), jnp.bfloat16),               # DMA double buffer
                pltpu.SemaphoreType.DMA((2,)),
            ],
        )
        partial_sums = pl.pallas_call(
            partial(_hxe_stream_kernel, tb=TB, e8=E8),
            out_shape=out_shape,
            grid_spec=grid_spec,
            compiler_params=pltpu.CompilerParams(dimension_semantics=("parallel",)),
        )(t_p, x_p, w_g, tab)

    # sum-then-divide (matches torch.mean up to fp rounding)
    return jnp.sum(partial_sums) / B


# ----------------------------------------------------------------------------
# Pure-numpy reference (mirrors the torch forward exactly)
# ----------------------------------------------------------------------------
def reference_loss(inputs, target, onehot_num, onehot_den, weights):
    x = np.asarray(inputs, np.float32)
    t = np.asarray(target)
    num = np.einsum("bc,bce->be", x, onehot_num[t])
    den = np.einsum("bc,bce->be", x, onehot_den[t])
    mask = num != 0
    val = np.where(mask, -np.log(np.where(mask, num, 1.0) / np.where(mask, den, 1.0)), 0.0)
    return float(np.mean(np.sum(weights[t] * val, axis=1)))


if __name__ == "__main__":
    # Small synthetic hierarchy: 8 leaves, 6 intern classes, depth-3 edges.
    hierarchy = Tree(
        "root",
        [
            Tree("A", [Tree("A0", ["l0", "l1"]), Tree("A1", ["l2", "l3"])]),
            Tree("B", [Tree("B0", ["l4", "l5"]), Tree("B1", ["l6", "l7"])]),
        ],
    )
    leaf_classes = ["l0", "l1", "l2", "l3", "l4", "l5", "l6", "l7"]
    intern_classes = ["A", "B", "A0", "A1", "B0", "B1"]

    def build_weight_tree(node, depth=0, alpha=0.5):
        w = float(np.exp(-alpha * depth))
        if isinstance(node, Tree):
            return Tree(w, [build_weight_tree(c, depth + 1, alpha) for c in node._children])
        return w

    weights_tree = build_weight_tree(hierarchy)
    onehot_num, onehot_den, weights = build_hxe_params(
        hierarchy, leaf_classes, intern_classes, weights_tree
    )

    B = 4
    C = len(leaf_classes)                      # 8 leaf classes
    T = C + len(intern_classes)                # 14 total classes

    key = jax.random.PRNGKey(0)
    k1, k2 = jax.random.split(key)
    logits = jax.random.normal(k1, (B, C), jnp.float32)
    probs = jax.nn.softmax(logits, axis=-1)    # class _probabilities_, as the module expects
    target = jax.random.randint(k2, (B,), 0, T, jnp.int32)

    ref = reference_loss(np.asarray(probs), np.asarray(target), onehot_num, onehot_den, weights)

    # Fast path: resident table, one batch tile (B=4 padded to 8).
    loss = float(jax.block_until_ready(
        hierarchical_ll_loss(probs, target, onehot_num, onehot_den, weights)))
    assert np.allclose(loss, ref, rtol=1e-4, atol=1e-5), (loss, ref)

    # Fast path with several grid tiles + padding (B=20, TB=8 -> 3 tiles, 4 padded samples).
    B2 = 20
    k3, k4 = jax.random.split(k2)
    probs2 = jax.nn.softmax(jax.random.normal(k3, (B2, C), jnp.float32), axis=-1)
    target2 = jax.random.randint(k4, (B2,), 0, T, jnp.int32)
    ref2 = reference_loss(np.asarray(probs2), np.asarray(target2), onehot_num, onehot_den, weights)
    loss2 = float(jax.block_until_ready(
        hierarchical_ll_loss(probs2, target2, onehot_num, onehot_den, weights, batch_tile=8)))
    assert np.allclose(loss2, ref2, rtol=1e-4, atol=1e-5), (loss2, ref2)

    # Streaming fallback (what hierarchies that overflow VMEM take): HBM table + manual DMA.
    loss3 = float(jax.block_until_ready(
        hierarchical_ll_loss(probs, target, onehot_num, onehot_den, weights, force_gather=True)))
    assert np.allclose(loss3, ref, rtol=1e-4, atol=1e-5), (loss3, ref)

    print("KERNEL_OK")
</pallas_src>

<mosaic_0001>
module attributes {stable_mosaic.version = 11 : i64} {
  func.func @_hxe_resident_kernel(%arg0: i32, %arg1: memref<8xi32, #tpu.memory_space<smem>>, %arg2: memref<8x128xf32, #tpu.memory_space<vmem>>, %arg3: memref<8x8xf32, #tpu.memory_space<vmem>>, %arg4: memref<14x16x128xbf16, #tpu.memory_space<vmem>>, %arg5: memref<1x1x1xf32, #tpu.memory_space<vmem>>, %arg6: memref<8x16x128xbf16, #tpu.memory_space<vmem>>) attributes {dimension_semantics = [#tpu.dimension_semantics<parallel>], iteration_bounds = array<i64: 1>, scalar_prefetch = 1 : i64, scratch_operands = 1 : i64, tpu.core_type = #tpu.core_type<tc>, window_params = [{transform_indices = @transform_0, window_bounds = array<i64: 8, 128>}, {transform_indices = @transform_1, window_bounds = array<i64: 8, 8>}, {pipeline_mode = #tpu.pipeline_mode<synchronous>, transform_indices = @transform_2, window_bounds = array<i64: 14, 16, 128>}, {transform_indices = @transform_3, window_bounds = array<i64: 1, 1, 1>}]} {
    %c8_i32 = arith.constant 8 : i32
    %0 = arith.muli %arg0, %c8_i32 : i32
    %cst = arith.constant 0.000000e+00 : f32
    %c0_i32 = arith.constant 0 : i32
    %c8_i32_0 = arith.constant 8 : i32
    %1 = arith.muli %c0_i32, %c8_i32_0 : i32
    %2 = tpu.assume_multiple %1, 8 : i32
    %3 = arith.addi %0, %2 : i32
    %c0_i32_1 = arith.constant 0 : i32
    %4 = arith.addi %3, %c0_i32_1 : i32
    %5 = arith.index_cast %4 : i32 to index
    %6 = memref.load %arg1[%5] : memref<8xi32, #tpu.memory_space<smem>>
    %7 = arith.index_cast %6 : i32 to index
    %c0 = arith.constant 0 : index
    %c0_2 = arith.constant 0 : index
    %8 = vector.load %arg4[%7, %c0, %c0_2] : memref<14x16x128xbf16, #tpu.memory_space<vmem>>, vector<1x16x128xbf16>
    %9 = vector.shape_cast %8 : vector<1x16x128xbf16> to vector<16x128xbf16>
    %c0_3 = arith.constant 0 : index
    %c0_4 = arith.constant 0 : index
    %c0_5 = arith.constant 0 : index
    %10 = vector.load %arg6[%c0_3, %c0_4, %c0_5] : memref<8x16x128xbf16, #tpu.memory_space<vmem>>, vector<1x16x128xbf16>
    %11 = vector.shape_cast %10 : vector<1x16x128xbf16> to vector<16x128xbf16>
    %12 = vector.shape_cast %9 : vector<16x128xbf16> to vector<1x16x128xbf16>
    tpu.vector_store %arg6[%c0_3, %c0_4, %c0_5], %12 {strides = array<i32>} : memref<8x16x128xbf16, #tpu.memory_space<vmem>>, vector<1x16x128xbf16>,
    %13 = arith.addi %0, %2 : i32
    %c1_i32 = arith.constant 1 : i32
    %14 = arith.addi %13, %c1_i32 : i32
    %15 = arith.index_cast %14 : i32 to index
    %16 = memref.load %arg1[%15] : memref<8xi32, #tpu.memory_space<smem>>
    %17 = arith.index_cast %16 : i32 to index
    %c0_6 = arith.constant 0 : index
    %c0_7 = arith.constant 0 : index
    %18 = vector.load %arg4[%17, %c0_6, %c0_7] : memref<14x16x128xbf16, #tpu.memory_space<vmem>>, vector<1x16x128xbf16>
    %19 = vector.shape_cast %18 : vector<1x16x128xbf16> to vector<16x128xbf16>
    %c1 = arith.constant 1 : index
    %c0_8 = arith.constant 0 : index
    %c0_9 = arith.constant 0 : index
    %20 = vector.load %arg6[%c1, %c0_8, %c0_9] : memref<8x16x128xbf16, #tpu.memory_space<vmem>>, vector<1x16x128xbf16>
    %21 = vector.shape_cast %20 : vector<1x16x128xbf16> to vector<16x128xbf16>
    %22 = vector.shape_cast %19 : vector<16x128xbf16> to vector<1x16x128xbf16>
    tpu.vector_store %arg6[%c1, %c0_8, %c0_9], %22 {strides = array<i32>} : memref<8x16x128xbf16, #tpu.memory_space<vmem>>, vector<1x16x128xbf16>,
    %23 = arith.addi %0, %2 : i32
    %c2_i32 = arith.constant 2 : i32
    %24 = arith.addi %23, %c2_i32 : i32
    %25 = arith.index_cast %24 : i32 to index
    %26 = memref.load %arg1[%25] : memref<8xi32, #tpu.memory_space<smem>>
    %27 = arith.index_cast %26 : i32 to index
    %c0_10 = arith.constant 0 : index
    %c0_11 = arith.constant 0 : index
    %28 = vector.load %arg4[%27, %c0_10, %c0_11] : memref<14x16x128xbf16, #tpu.memory_space<vmem>>, vector<1x16x128xbf16>
    %29 = vector.shape_cast %28 : vector<1x16x128xbf16> to vector<16x128xbf16>
    %c2 = arith.constant 2 : index
    %c0_12 = arith.constant 0 : index
    %c0_13 = arith.constant 0 : index
    %30 = vector.load %arg6[%c2, %c0_12, %c0_13] : memref<8x16x128xbf16, #tpu.memory_space<vmem>>, vector<1x16x128xbf16>
    %31 = vector.shape_cast %30 : vector<1x16x128xbf16> to vector<16x128xbf16>
    %32 = vector.shape_cast %29 : vector<16x128xbf16> to vector<1x16x128xbf16>
    tpu.vector_store %arg6[%c2, %c0_12, %c0_13], %32 {strides = array<i32>} : memref<8x16x128xbf16, #tpu.memory_space<vmem>>, vector<1x16x128xbf16>,
    %33 = arith.addi %0, %2 : i32
    %c3_i32 = arith.constant 3 : i32
    %34 = arith.addi %33, %c3_i32 : i32
    %35 = arith.index_cast %34 : i32 to index
    %36 = memref.load %arg1[%35] : memref<8xi32, #tpu.memory_space<smem>>
    %37 = arith.index_cast %36 : i32 to index
    %c0_14 = arith.constant 0 : index
    %c0_15 = arith.constant 0 : index
    %38 = vector.load %arg4[%37, %c0_14, %c0_15] : memref<14x16x128xbf16, #tpu.memory_space<vmem>>, vector<1x16x128xbf16>
    %39 = vector.shape_cast %38 : vector<1x16x128xbf16> to vector<16x128xbf16>
    %c3 = arith.constant 3 : index
    %c0_16 = arith.constant 0 : index
    %c0_17 = arith.constant 0 : index
    %40 = vector.load %arg6[%c3, %c0_16, %c0_17] : memref<8x16x128xbf16, #tpu.memory_space<vmem>>, vector<1x16x128xbf16>
    %41 = vector.shape_cast %40 : vector<1x16x128xbf16> to vector<16x128xbf16>
    %42 = vector.shape_cast %39 : vector<16x128xbf16> to vector<1x16x128xbf16>
    tpu.vector_store %arg6[%c3, %c0_16, %c0_17], %42 {strides = array<i32>} : memref<8x16x128xbf16, #tpu.memory_space<vmem>>, vector<1x16x128xbf16>,
    %43 = arith.addi %0, %2 : i32
    %c4_i32 = arith.constant 4 : i32
    %44 = arith.addi %43, %c4_i32 : i32
    %45 = arith.index_cast %44 : i32 to index
    %46 = memref.load %arg1[%45] : memref<8xi32, #tpu.memory_space<smem>>
    %47 = arith.index_cast %46 : i32 to index
    %c0_18 = arith.constant 0 : index
    %c0_19 = arith.constant 0 : index
    %48 = vector.load %arg4[%47, %c0_18, %c0_19] : memref<14x16x128xbf16, #tpu.memory_space<vmem>>, vector<1x16x128xbf16>
    %49 = vector.shape_cast %48 : vector<1x16x128xbf16> to vector<16x128xbf16>
    %c4 = arith.constant 4 : index
    %c0_20 = arith.constant 0 : index
    %c0_21 = arith.constant 0 : index
    %50 = vector.load %arg6[%c4, %c0_20, %c0_21] : memref<8x16x128xbf16, #tpu.memory_space<vmem>>, vector<1x16x128xbf16>
    %51 = vector.shape_cast %50 : vector<1x16x128xbf16> to vector<16x128xbf16>
    %52 = vector.shape_cast %49 : vector<16x128xbf16> to vector<1x16x128xbf16>
    tpu.vector_store %arg6[%c4, %c0_20, %c0_21], %52 {strides = array<i32>} : memref<8x16x128xbf16, #tpu.memory_space<vmem>>, vector<1x16x128xbf16>,
    %53 = arith.addi %0, %2 : i32
    %c5_i32 = arith.constant 5 : i32
    %54 = arith.addi %53, %c5_i32 : i32
    %55 = arith.index_cast %54 : i32 to index
    %56 = memref.load %arg1[%55] : memref<8xi32, #tpu.memory_space<smem>>
    %57 = arith.index_cast %56 : i32 to index
    %c0_22 = arith.constant 0 : index
    %c0_23 = arith.constant 0 : index
    %58 = vector.load %arg4[%57, %c0_22, %c0_23] : memref<14x16x128xbf16, #tpu.memory_space<vmem>>, vector<1x16x128xbf16>
    %59 = vector.shape_cast %58 : vector<1x16x128xbf16> to vector<16x128xbf16>
    %c5 = arith.constant 5 : index
    %c0_24 = arith.constant 0 : index
    %c0_25 = arith.constant 0 : index
    %60 = vector.load %arg6[%c5, %c0_24, %c0_25] : memref<8x16x128xbf16, #tpu.memory_space<vmem>>, vector<1x16x128xbf16>
    %61 = vector.shape_cast %60 : vector<1x16x128xbf16> to vector<16x128xbf16>
    %62 = vector.shape_cast %59 : vector<16x128xbf16> to vector<1x16x128xbf16>
    tpu.vector_store %arg6[%c5, %c0_24, %c0_25], %62 {strides = array<i32>} : memref<8x16x128xbf16, #tpu.memory_space<vmem>>, vector<1x16x128xbf16>,
    %63 = arith.addi %0, %2 : i32
    %c6_i32 = arith.constant 6 : i32
    %64 = arith.addi %63, %c6_i32 : i32
    %65 = arith.index_cast %64 : i32 to index
    %66 = memref.load %arg1[%65] : memref<8xi32, #tpu.memory_space<smem>>
    %67 = arith.index_cast %66 : i32 to index
    %c0_26 = arith.constant 0 : index
    %c0_27 = arith.constant 0 : index
    %68 = vector.load %arg4[%67, %c0_26, %c0_27] : memref<14x16x128xbf16, #tpu.memory_space<vmem>>, vector<1x16x128xbf16>
    %69 = vector.shape_cast %68 : vector<1x16x128xbf16> to vector<16x128xbf16>
    %c6 = arith.constant 6 : index
    %c0_28 = arith.constant 0 : index
    %c0_29 = arith.constant 0 : index
    %70 = vector.load %arg6[%c6, %c0_28, %c0_29] : memref<8x16x128xbf16, #tpu.memory_space<vmem>>, vector<1x16x128xbf16>
    %71 = vector.shape_cast %70 : vector<1x16x128xbf16> to vector<16x128xbf16>
    %72 = vector.shape_cast %69 : vector<16x128xbf16> to vector<1x16x128xbf16>
    tpu.vector_store %arg6[%c6, %c0_28, %c0_29], %72 {strides = array<i32>} : memref<8x16x128xbf16, #tpu.memory_space<vmem>>, vector<1x16x128xbf16>,
    %73 = arith.addi %0, %2 : i32
    %c7_i32 = arith.constant 7 : i32
    %74 = arith.addi %73, %c7_i32 : i32
    %75 = arith.index_cast %74 : i32 to index
    %76 = memref.load %arg1[%75] : memref<8xi32, #tpu.memory_space<smem>>
    %77 = arith.index_cast %76 : i32 to index
    %c0_30 = arith.constant 0 : index
    %c0_31 = arith.constant 0 : index
    %78 = vector.load %arg4[%77, %c0_30, %c0_31] : memref<14x16x128xbf16, #tpu.memory_space<vmem>>, vector<1x16x128xbf16>
    %79 = vector.shape_cast %78 : vector<1x16x128xbf16> to vector<16x128xbf16>
    %c7 = arith.constant 7 : index
    %c0_32 = arith.constant 0 : index
    %c0_33 = arith.constant 0 : index
    %80 = vector.load %arg6[%c7, %c0_32, %c0_33] : memref<8x16x128xbf16, #tpu.memory_space<vmem>>, vector<1x16x128xbf16>
    %81 = vector.shape_cast %80 : vector<1x16x128xbf16> to vector<16x128xbf16>
    %82 = vector.shape_cast %79 : vector<16x128xbf16> to vector<1x16x128xbf16>
    tpu.vector_store %arg6[%c7, %c0_32, %c0_33], %82 {strides = array<i32>} : memref<8x16x128xbf16, #tpu.memory_space<vmem>>, vector<1x16x128xbf16>,
    %c0_34 = arith.constant 0 : index
    %c0_35 = arith.constant 0 : index
    %c0_36 = arith.constant 0 : index
    %83 = vector.load %arg6[%c0_34, %c0_35, %c0_36] : memref<8x16x128xbf16, #tpu.memory_space<vmem>>, vector<8x16x128xbf16>
    %84 = arith.index_cast %2 : i32 to index
    %c0_37 = arith.constant 0 : index
    %85 = vector.load %arg2[%84, %c0_37] : memref<8x128xf32, #tpu.memory_space<vmem>>, vector<8x128xf32>
    %86 = arith.index_cast %2 : i32 to index
    %c0_38 = arith.constant 0 : index
    %87 = vector.load %arg3[%86, %c0_38] : memref<8x8xf32, #tpu.memory_space<vmem>>, vector<8x8xf32>
    %88 = vector.shape_cast %85 : vector<8x128xf32> to vector<8x1x128xf32>
    %cst_39 = arith.constant 0.000000e+00 : bf16
    %89 = vector.broadcast %cst_39 : bf16 to vector<8x16x128xbf16>
    %90 = arith.cmpf one, %83, %89 : vector<8x16x128xbf16>
    %cst_40 = arith.constant 0.000000e+00 : f32
    %91 = vector.shape_cast %88 : vector<8x1x128xf32> to vector<8x1x128xf32>
    %92 = vector.broadcast %91 : vector<8x1x128xf32> to vector<8x16x128xf32>
    %93 = vector.broadcast %cst_40 : f32 to vector<8x16x128xf32>
    %94 = arith.select %90, %92, %93 : vector<8x16x128xi1>, vector<8x16x128xf32>
    %cst_41 = arith.constant dense<0.000000e+00> : vector<8x16xf32>
    %95 = vector.multi_reduction <add>, %94, %cst_41 [2] : vector<8x16x128xf32> to vector<8x16xf32>
    %96 = vector.extract_strided_slice %95 {offsets = [0, 0], sizes = [8, 8], strides = [1, 1]} : vector<8x16xf32> to vector<8x8xf32>
    %97 = vector.extract_strided_slice %95 {offsets = [0, 8], sizes = [8, 8], strides = [1, 1]} : vector<8x16xf32> to vector<8x8xf32>
    %cst_42 = arith.constant 0.000000e+00 : f32
    %98 = vector.broadcast %cst_42 : f32 to vector<8x8xf32>
    %99 = arith.cmpf one, %96, %98 : vector<8x8xf32>
    %cst_43 = arith.constant 1.000000e+00 : f32
    %100 = vector.broadcast %cst_43 : f32 to vector<8x8xf32>
    %101 = arith.select %99, %97, %100 : vector<8x8xi1>, vector<8x8xf32>
    %102 = math.log %101 : vector<8x8xf32>
    %cst_44 = arith.constant 1.000000e+00 : f32
    %103 = vector.broadcast %cst_44 : f32 to vector<8x8xf32>
    %104 = arith.select %99, %96, %103 : vector<8x8xi1>, vector<8x8xf32>
    %105 = math.log %104 : vector<8x8xf32>
    %106 = arith.subf %102, %105 : vector<8x8xf32>
    %cst_45 = arith.constant 0.000000e+00 : f32
    %107 = vector.broadcast %cst_45 : f32 to vector<8x8xf32>
    %108 = arith.select %99, %106, %107 : vector<8x8xi1>, vector<8x8xf32>
    %109 = arith.mulf %87, %108 : vector<8x8xf32>
    %110 = vector.shape_cast %109 : vector<8x8xf32> to vector<1x8x8xf32>
    %cst_46 = arith.constant dense<0.000000e+00> : vector<1xf32>
    %111 = vector.multi_reduction <add>, %110, %cst_46 [1, 2] : vector<1x8x8xf32> to vector<1xf32>
    %112 = vector.shape_cast %111 : vector<1xf32> to vector<1x1x1xf32>
    %113 = vector.extract %112[0, 0, 0] : f32 from vector<1x1x1xf32>
    %114 = arith.addf %cst, %113 : f32
    %c1_i32_47 = arith.constant 1 : i32
    %115 = vector.broadcast %114 : f32 to vector<1x1x1xf32>
    %c0_48 = arith.constant 0 : index
    %c0_49 = arith.constant 0 : index
    %c0_50 = arith.constant 0 : index
    %116 = vector.load %arg5[%c0_48, %c0_49, %c0_50] : memref<1x1x1xf32, #tpu.memory_space<vmem>>, vector<1x1x1xf32>
    tpu.vector_store %arg5[%c0_48, %c0_49, %c0_50], %115 {strides = array<i32>} : memref<1x1x1xf32, #tpu.memory_space<vmem>>, vector<1x1x1xf32>,
    return
  }
  func.func @transform_0(%arg0: i32, %arg1: memref<8xi32, #tpu.memory_space<smem>>) -> (i32, i32) {
    %c0_i32 = arith.constant 0 : i32
    %c0_i32_0 = arith.constant 0 : i32
    return %arg0, %c0_i32 : i32, i32
  }
  func.func @transform_1(%arg0: i32, %arg1: memref<8xi32, #tpu.memory_space<smem>>) -> (i32, i32) {
    %c0_i32 = arith.constant 0 : i32
    %c0_i32_0 = arith.constant 0 : i32
    return %arg0, %c0_i32 : i32, i32
  }
  func.func @transform_2(%arg0: i32, %arg1: memref<8xi32, #tpu.memory_space<smem>>) -> (i32, i32, i32) {
    %c0_i32 = arith.constant 0 : i32
    %c0_i32_0 = arith.constant 0 : i32
    %c0_i32_1 = arith.constant 0 : i32
    %c0_i32_2 = arith.constant 0 : i32
    return %c0_i32, %c0_i32_0, %c0_i32_1 : i32, i32, i32
  }
  func.func @transform_3(%arg0: i32, %arg1: memref<8xi32, #tpu.memory_space<smem>>) -> (i32, i32, i32) {
    %c0_i32 = arith.constant 0 : i32
    %c0_i32_0 = arith.constant 0 : i32
    %c0_i32_1 = arith.constant 0 : i32
    return %arg0, %c0_i32, %c0_i32_0 : i32, i32, i32
  }
}

</mosaic_0001>

<bundles_post_ra>
// kernel: tpu_custom_call.1
= control target key start
LH: loop header
LB: loop body
LE: loop exit
PB: predicated region body
PF: predicated region fallthrough
CT: control target
= control target key end

     0   :  { %s651_s18 = smov [#allocation4]   ;;  %s781_s0 = inlined_call_operand.hbm [shape: s32[8], index: 0, kind: input, shape index: {}]   ;;  %s782_s1 = inlined_call_operand.hbm [shape: f32[8,128], index: 1, kind: input, shape index: {}]   ;;  %s783_s2 = inlined_call_operand.hbm [shape: f32[8,8], index: 2, kind: input, shape index: {}]   ;;  %s784_s3 = inlined_call_operand.hbm [shape: bf16[14,16,128], index: 3, kind: input, shape index: {}]   ;;  %s785_s4 = inlined_call_operand.hbm [shape: f32[1,1,1], index: 4, kind: output, shape index: {}]  }
   0x1   :  { %s10_s17 = sshll.u32 %s781_s0, 4  ;;  %s11_s17 = int_to_ptr.hbm [resolvable:$true] %s10_s17 }
   0x2   :  { %13 = dma.hbm_to_smem %s11_s17, 16, %s651_s18, [#allocation3] }
   0x3   :  { %643 = dma.done.wait [#allocation3], 16 }
   0x4   :  { %644 = vsyncadd [#allocation3], 4294967280 }
   0x5   :  { %16 = sfence }
   0x6   :  { %17 = vsyncpa [#allocation6], 0 }
   0x7   :  { %18 = vsyncpa [#allocation9], 0  ;;  %s36_s21 = sshll.u32 %s783_s2, 4  ;;  %s37_s21 = int_to_ptr.hbm [resolvable:$true] %s36_s21 }
   0x8   :  { %19 = vsyncpa [#allocation7], 0  ;;  %s652_s22 = smov [#allocation8]   ;;  %s25_s0 = sshll.u32 %s782_s1, 4  ;;  %s26_s0 = int_to_ptr.hbm [resolvable:$true] %s25_s0 }
   0x9   :  { %s38_s23 = sshll.u32 %s652_s22, 4  ;;  %s653_s26 = smov [#allocation5]   ;;  %s39_s23 = int_to_ptr.vmem [resolvable:$true] %s38_s23 }
   0xa   :  { %41 = dma.hbm_to_vmem [thread:$0]  %s37_s21, 128, %s39_s23, [#allocation9]  }
   0xb   :  { %s27_s27 = sshll.u32 %s653_s26, 4  ;;  %s46_s30 = sshll.u32 %s784_s3, 4  ;;  %s28_s27 = int_to_ptr.vmem [resolvable:$true] %s27_s27  ;;  %s47_s30 = int_to_ptr.hbm [resolvable:$true] %s46_s30 }
   0xc   :  { %30 = dma.hbm_to_vmem [thread:$0]  %s26_s0, 128, %s28_s27, [#allocation6]  }
   0xd   :  { %s654_s2 = smov [#allocation10]   ;;  %s655_s6 = smov 64  }
   0xe   :  { %s48_s5 = sshll.u32 %s654_s2, 4  ;;  %s656_s7 = smov 4   ;;  %s49_s5 = int_to_ptr.vmem [resolvable:$true] %s48_s5 }
   0xf   :  { %54 = dma.hbm_to_vmem [thread:$0]  %s47_s30, 1792, %s49_s5, [#allocation9], %s655_s6, %s655_s6, %s656_s7  }
  0x10   :  { %645 = dma.done.wait [#allocation6], 128  }
  0x11   :  { %646 = vsyncadd [#allocation6], 4294967168 }
  0x12   :  { %647 = dma.done.wait [#allocation9], 1920  }
  0x13   :  { %648 = vsyncadd [#allocation9], 4294965376  ;;  %s429_s1 = sld [smem:[#allocation4 + $0x2]]  ;;  %v695_v1 = vld [vmem:[#allocation5] sm:$0xff]  ;;  %s657_s29 = smov [#allocation11]  }
  0x14   :  { %s69_s8 = sld [smem:[#allocation4]]  ;;  %v167_v5 = vrot.slane %v695_v1, 2  ;;  %v205_v13 = vperm.slane %v695_v1, 0  ;;  %v166_v19 = vrot.slane %v695_v1, 1  ;;  %v169_v29 = vrot.slane %v695_v1, 4  ;;  %s395_s30 = sshll.u32 %s657_s29, 4  ;;  %s396_s30 = int_to_ptr.vmem [resolvable:$true] %s395_s30 }
  0x15   :  { %s426_s9 = sld [smem:[#allocation4 + $0x1]]  ;;  %v168_v32 = vrot.slane %v695_v1, 3  ;;  %v170_v40 = vrot.slane %v695_v1, 5  ;;  %v172_v50 = vrot.slane %v695_v1, 7  ;;  %v171_v53 = vrot.slane %v695_v1, 6  ;;  %s397_s6 = sshll.u32 %s785_s4, 4  ;;  %s398_s6 = int_to_ptr.hbm [resolvable:$true] %s397_s6 }
  0x16   :  { %s432_s10 = sld [smem:[#allocation4 + $0x3]]  ;;  %v207_v10 = vperm.slane %v167_v5, 0  ;;  %v206_v25 = vperm.slane %v166_v19, 0  ;;  %v209_v36 = vperm.slane %v169_v29, 0 }
  0x17   :  { %s435_s11 = sld [smem:[#allocation4 + $0x4]]  ;;  %v208_v37 = vperm.slane %v168_v32, 0  ;;  %v210_v46 = vperm.slane %v170_v40, 0  ;;  %v212_v57 = vperm.slane %v172_v50, 0  ;;  %v211_v58 = vperm.slane %v171_v53, 0 }
  0x18   :  { %s438_s12 = sld [smem:[#allocation4 + $0x5]] }
  0x19   :  { %s449_s3 = sshll.u32 %s429_s1, 3  ;;  %s441_s13 = sld [smem:[#allocation4 + $0x6]] }
  0x1a   :  { %s447_s14 = sshll.u32 %s69_s8, 3  ;;  %s91_s15 = scalar_lea.vmem [#allocation10], %s449_s3 }
  0x1b   :  { %v92_v0 = vld [vmem:[%s91_s15] sm:$0xff]   ;;  %s448_s16 = sshll.u32 %s426_s9, 3  ;;  %s72_s17 = scalar_lea.vmem [#allocation10], %s447_s14 }
  0x1c   :  { %95 = vst [vmem:[#allocation2 + $0x10] sm:$0xff] %v92_v0   ;;  %v73_v2 = vld [vmem:[%s72_s17] sm:$0xff]   ;;  %s450_s18 = sshll.u32 %s432_s10, 3  ;;  %s81_s19 = scalar_lea.vmem [#allocation10], %s448_s16 }
  0x1d   :  { %75 = vst [vmem:[#allocation2] sm:$0xff] %v73_v2   ;;  %v82_v3 = vld [vmem:[%s81_s19] sm:$0xff]   ;;  %s451_s20 = sshll.u32 %s435_s11, 3  ;;  %s101_s21 = scalar_lea.vmem [#allocation10], %s450_s18 }
  0x1e   :  { %85 = vst [vmem:[#allocation2 + $0x8] sm:$0xff] %v82_v3   ;;  %v102_v4 = vld [vmem:[%s101_s21] sm:$0xff]   ;;  %s452_s22 = sshll.u32 %s438_s12, 3  ;;  %s111_s23 = scalar_lea.vmem [#allocation10], %s451_s20 }
  0x1f   :  { %105 = vst [vmem:[#allocation2 + $0x18] sm:$0xff] %v102_v4   ;;  %v112_v6 = vld [vmem:[%s111_s23] sm:$0xff]   ;;  %s453_s24 = sshll.u32 %s441_s13, 3  ;;  %s121_s25 = scalar_lea.vmem [#allocation10], %s452_s22 }
  0x20   :  { %115 = vst [vmem:[#allocation2 + $0x20] sm:$0xff] %v112_v6   ;;  %v122_v7 = vld [vmem:[%s121_s25] sm:$0xff]   ;;  %s444_s0 = sld [smem:[#allocation4 + $0x7]]  ;;  %s131_s26 = scalar_lea.vmem [#allocation10], %s453_s24 }
  0x21   :  { %125 = vst [vmem:[#allocation2 + $0x28] sm:$0xff] %v122_v7   ;;  %v132_v8 = vld [vmem:[%s131_s26] sm:$0xff]  }
  0x22   :  { %135 = vst [vmem:[#allocation2 + $0x30] sm:$0xff] %v132_v8  }
  0x23   :  { %v488_v9 = vld [vmem:[#allocation2 + $0x10] sm:$0xff]  }
  0x24   :  { %v465_v11 = vunpack.c.l.bf16 %v488_v9  ;;  %v456_v12 = vld [vmem:[#allocation2] sm:$0xff]   ;;  %v466_v17 = vunpack.c.h.bf16 %v488_v9 }
  0x25   :  { %v458_v14 = vunpack.c.h.bf16 %v456_v12  ;;  %v457_v15 = vunpack.c.l.bf16 %v456_v12  ;;  %v487_v16 = vld [vmem:[#allocation2 + $0x8] sm:$0xff]  }
  0x26   :  { %vm193_vm0 = vcmp.ne.f32.partialorder %v465_v11, 0.0  ;;  %v462_v18 = vunpack.c.h.bf16 %v487_v16  ;;  %s454_s27 = sshll.u32 %s444_s0, 3  ;;  %v461_v21 = vunpack.c.l.bf16 %v487_v16  ;;  %vm194_vm3 = vcmp.ne.f32.partialorder %v466_v17, 0.0  ;;  %v489_v27 = vld [vmem:[#allocation2 + $0x18] sm:$0xff]  }
  0x27   :  { %v225_v20 = vsel %vm193_vm0, %v207_v10, 0.0  ;;  %vm190_vm1 = vcmp.ne.f32.partialorder %v458_v14, 0.0  ;;  %vm189_vm2 = vcmp.ne.f32.partialorder %v457_v15, 0.0  ;;  %s141_s28 = scalar_lea.vmem [#allocation10], %s454_s27  ;;  %v490_v26 = vld [vmem:[#allocation2 + $0x20] sm:$0xff]   ;;  %v226_v28 = vsel %vm194_vm3, %v207_v10, 0.0 }
  0x28   :  { %245 = vadd.xlane.f32.xlu2 %v225_v20  ;;  %v222_v22 = vsel %vm190_vm1, %v205_v13, 0.0  ;;  %v221_v23 = vsel %vm189_vm2, %v205_v13, 0.0  ;;  %v142_v24 = vld [vmem:[%s141_s28] sm:$0xff]   ;;  %vm192_vm4 = vcmp.ne.f32.partialorder %v462_v18, 0.0  ;;  %vm191_vm5 = vcmp.ne.f32.partialorder %v461_v21, 0.0  ;;  %v491_v38 = vld [vmem:[#allocation2 + $0x28] sm:$0xff]  }
  0x29   :  { %239 = vadd.xlane.f32.xlu1 %v222_v22  ;;  %237 = vadd.xlane.f32.xlu0 %v221_v23  ;;  %145 = vst [vmem:[#allocation2 + $0x38] sm:$0xff] %v142_v24   ;;  %v224_v30 = vsel %vm192_vm4, %v206_v25, 0.0  ;;  %v223_v31 = vsel %vm191_vm5, %v206_v25, 0.0  ;;  %v473_v33 = vunpack.c.l.bf16 %v490_v26  ;;  %v470_v34 = vunpack.c.h.bf16 %v489_v27  ;;  %v492_v48 = vld [vmem:[#allocation2 + $0x30] sm:$0xff]  }
  0x2a   :  { %v469_v35 = vunpack.c.l.bf16 %v489_v27  ;;  %v478_v43 = vunpack.c.h.bf16 %v491_v38  ;;  %v477_v44 = vunpack.c.l.bf16 %v491_v38  ;;  %v474_v45 = vunpack.c.h.bf16 %v490_v26 }
  0x2b   :  { %vm197_vm6 = vcmp.ne.f32.partialorder %v473_v33, 0.0  ;;  %vm196_vm7 = vcmp.ne.f32.partialorder %v470_v34, 0.0  ;;  %v481_v55 = vunpack.c.l.bf16 %v492_v48  ;;  %v482_v56 = vunpack.c.h.bf16 %v492_v48 }
  0x2c   :  { %vm195_vm8 = vcmp.ne.f32.partialorder %v469_v35, 0.0  ;;  %v229_v39 = vsel %vm197_vm6, %v209_v36, 0.0  ;;  %v228_v41 = vsel %vm196_vm7, %v208_v37, 0.0  ;;  %vm200_vm9 = vcmp.ne.f32.partialorder %v478_v43, 0.0 }
  0x2d   :  { %v227_v42 = vsel %vm195_vm8, %v208_v37, 0.0  ;;  %vm199_vm10 = vcmp.ne.f32.partialorder %v477_v44, 0.0  ;;  %vm198_vm11 = vcmp.ne.f32.partialorder %v474_v45, 0.0  ;;  %v232_v49 = vsel %vm200_vm9, %v210_v46, 0.0 }
  0x2e   :  { %v231_v51 = vsel %vm199_vm10, %v210_v46, 0.0  ;;  %v230_v52 = vsel %vm198_vm11, %v209_v36, 0.0  ;;  %vm201_vm13 = vcmp.ne.f32.partialorder %v481_v55, 0.0  ;;  %vm202_vm14 = vcmp.ne.f32.partialorder %v482_v56, 0.0 }
  0x2f   :  { %v233_v60 = vsel %vm201_vm13, %v211_v58, 0.0  ;;  %v234_v61 = vsel %vm202_vm14, %v211_v58, 0.0  ;;  %vm359_vm8 = vcmask 1041409   ;;  %vm361_vm9 = vcmask 1042434  }
  0x30   :  { %247 = vadd.xlane.f32.xlu2 %v226_v28  ;;  %v493_v47 = vld [vmem:[#allocation2 + $0x38] sm:$0xff]   ;;  %vm363_vm10 = vcmask 1043459   ;;  %vm365_vm11 = vcmask 1044484   ;;  %vm369_vm13 = vcmask 1046534   ;;  %vm371_vm14 = vcmask 1047559  }
  0x31   :  { %243 = vadd.xlane.f32.xlu1 %v224_v30  ;;  %241 = vadd.xlane.f32.xlu0 %v223_v31  ;;  %v485_v54 = vunpack.c.l.bf16 %v493_v47  ;;  %v486_v62 = vunpack.c.h.bf16 %v493_v47 }
  0x33   :  { %vm203_vm12 = vcmp.ne.f32.partialorder %v485_v54, 0.0  ;;  %vm204_vm15 = vcmp.ne.f32.partialorder %v486_v62, 0.0 }
  0x34   :  { %v235_v59 = vsel %vm203_vm12, %v212_v57, 0.0  ;;  %v236_v63 = vsel %vm204_vm15, %v212_v57, 0.0  ;;  %vm367_vm12 = vcmask 1045509   ;;  %vm375_vm15 = vcmask 64512  }
  0x38   :  { %253 = vadd.xlane.f32.xlu2 %v229_v39  ;;  %v349_v39 = vlaneseq }
  0x39   :  { %251 = vadd.xlane.f32.xlu1 %v228_v41  ;;  %249 = vadd.xlane.f32.xlu0 %v227_v42 }
  0x40   :  { %259 = vadd.xlane.f32.xlu2 %v232_v49 }
  0x41   :  { %257 = vadd.xlane.f32.xlu1 %v231_v51  ;;  %255 = vadd.xlane.f32.xlu0 %v230_v52 }
  0x48   :  { %265 = vadd.xlane.f32.xlu2 %v235_v59  ;;  %v350_v59 = vand.u32 127, %v349_v39 }
  0x49   :  { %261 = vadd.xlane.f32.xlu0 %v233_v60  ;;  %263 = vadd.xlane.f32.xlu1 %v234_v61 }
  0x51   :  { %267 = vadd.xlane.f32.xlu0 %v236_v63 }
  0x9b   :  { %v705_v0 = vpop.xlane.xlu2 %245 }
  0x9c   :  { %v240_v1 = vpop.xlane.xlu1 %239  ;;  %v707_v2 = vpop.xlane.xlu0 %237  ;;  %vm271_vm0 = vcmp.ne.f32.partialorder %v705_v0, 0.0 }
  0x9d   :  { %vm269_vm1 = vcmp.ne.f32.partialorder %v707_v2, 0.0  ;;  %v303_v6 = vsel %vm271_vm0, %v705_v0, 1.0 }
  0x9e   :  { %v277_v8 = vsel %vm269_vm1, %v240_v1, 1.0  ;;  %503 = vlog2.f32 %v303_v6  ;;  %v301_v13 = vsel %vm269_vm1, %v707_v2, 1.0 }
  0x9f   :  { %505 = vlog2.f32 %v277_v8 }
  0xa3   :  { %v248_v3 = vpop.xlane.xlu2 %247 }
  0xa4   :  { %v244_v4 = vpop.xlane.xlu1 %243  ;;  %v709_v5 = vpop.xlane.xlu0 %241  ;;  %v279_v14 = vsel %vm271_vm0, %v248_v3, 1.0 }
  0xa5   :  { %vm270_vm2 = vcmp.ne.f32.partialorder %v709_v5, 0.0  ;;  %v504_v19 = vpop.eup %503 }
  0xa6   :  { %v278_v11 = vsel %vm270_vm2, %v244_v4, 1.0  ;;  %v302_v12 = vsel %vm270_vm2, %v709_v5, 1.0  ;;  %v506_v22 = vpop.eup %505  ;;  %v314_v42 = vmul.f32 0.6931472, %v504_v19 }
  0xa7   :  { %507 = vlog2.f32 %v278_v11  ;;  %v286_v40 = vmul.f32 0.6931472, %v506_v22 }
  0xa8   :  { %509 = vlog2.f32 %v302_v12 }
  0xa9   :  { %511 = vlog2.f32 %v301_v13 }
  0xaa   :  { %513 = vlog2.f32 %v279_v14 }
  0xab   :  { %v717_v7 = vpop.xlane.xlu2 %253 }
  0xac   :  { %v252_v9 = vpop.xlane.xlu1 %251  ;;  %v721_v10 = vpop.xlane.xlu0 %249  ;;  %vm273_vm4 = vcmp.ne.f32.partialorder %v717_v7, 0.0 }
  0xad   :  { %vm272_vm3 = vcmp.ne.f32.partialorder %v721_v10, 0.0  ;;  %v305_v17 = vsel %vm273_vm4, %v717_v7, 1.0  ;;  %v508_v24 = vpop.eup %507 }
  0xae   :  { %v280_v15 = vsel %vm272_vm3, %v252_v9, 1.0  ;;  %v304_v16 = vsel %vm272_vm3, %v721_v10, 1.0  ;;  %v510_v26 = vpop.eup %509  ;;  %v288_v31 = vmul.f32 0.6931472, %v508_v24 }
  0xaf   :  { %515 = vlog2.f32 %v280_v15  ;;  %v512_v28 = vpop.eup %511  ;;  %v312_v32 = vmul.f32 0.6931472, %v510_v26 }
  0xb0   :  { %517 = vlog2.f32 %v304_v16  ;;  %v514_v29 = vpop.eup %513  ;;  %v310_v41 = vmul.f32 0.6931472, %v512_v28 }
  0xb1   :  { %519 = vlog2.f32 %v305_v17  ;;  %v326_v43 = vsub.f32 %v288_v31, %v312_v32  ;;  %v290_v51 = vmul.f32 0.6931472, %v514_v29 }
  0xb2   :  { %v325_v54 = vsub.f32 %v286_v40, %v310_v41 }
  0xb3   :  { %v260_v18 = vpop.xlane.xlu2 %259  ;;  %v334_v55 = vsel %vm270_vm2, %v326_v43, 0.0  ;;  %v327_v60 = vsub.f32 %v290_v51, %v314_v42 }
  0xb4   :  { %v743_v20 = vpop.xlane.xlu1 %257  ;;  %v256_v21 = vpop.xlane.xlu0 %255  ;;  %v333_v1 = vsel %vm269_vm1, %v325_v54, 0.0  ;;  %v352_v6 = vperm.slane %v334_v55, %v350_v59 }
  0xb5   :  { %vm274_vm5 = vcmp.ne.f32.partialorder %v743_v20, 0.0  ;;  %v281_v23 = vsel %vm273_vm4, %v256_v21, 1.0  ;;  %v516_v30 = vpop.eup %515  ;;  %v351_v13 = vperm.slane %v333_v1, %v350_v59  ;;  %v335_v14 = vsel %vm271_vm0, %v327_v60, 0.0 }
  0xb6   :  { %v306_v25 = vsel %vm274_vm5, %v743_v20, 1.0  ;;  %521 = vlog2.f32 %v281_v23  ;;  %v282_v27 = vsel %vm274_vm5, %v260_v18, 1.0  ;;  %v518_v33 = vpop.eup %517  ;;  %v292_v47 = vmul.f32 0.6931472, %v516_v30  ;;  %v164_v30 = vld [vmem:[#allocation8] sm:$0xff] }
  0xb7   :  { %523 = vlog2.f32 %v306_v25  ;;  %v520_v35 = vpop.eup %519  ;;  %v316_v48 = vmul.f32 0.6931472, %v518_v33  ;;  %v360_v16 = vsel %vm359_vm8, %v352_v6, %v351_v13  ;;  %v353_v18 = vperm.slane %v335_v14, %v350_v59 }
  0xb8   :  { %525 = vlog2.f32 %v282_v27  ;;  %v318_v52 = vmul.f32 0.6931472, %v520_v35  ;;  %vm388_vm0 = vcmask 0  }
  0xb9   :  { %v328_v56 = vsub.f32 %v292_v47, %v316_v48  ;;  %v362_v0 = vsel %vm361_vm9, %v353_v18, %v360_v16 }
  0xbb   :  { %v753_v34 = vpop.xlane.xlu2 %265  ;;  %v336_v5 = vsel %vm272_vm3, %v328_v56, 0.0 }
  0xbc   :  { %v262_v36 = vpop.xlane.xlu0 %261  ;;  %v264_v37 = vpop.xlane.xlu1 %263  ;;  %vm276_vm6 = vcmp.ne.f32.partialorder %v753_v34, 0.0  ;;  %v354_v17 = vperm.slane %v336_v5, %v350_v59 }
  0xbd   :  { %v522_v38 = vpop.eup %521  ;;  %vm275_vm7 = vcmp.ne.f32.partialorder %v262_v36, 0.0  ;;  %v308_v49 = vsel %vm276_vm6, %v753_v34, 1.0 }
  0xbe   :  { %v307_v44 = vsel %vm275_vm7, %v262_v36, 1.0  ;;  %v283_v45 = vsel %vm275_vm7, %v264_v37, 1.0  ;;  %v524_v46 = vpop.eup %523  ;;  %v294_v53 = vmul.f32 0.6931472, %v522_v38  ;;  %v364_v25 = vsel %vm363_vm10, %v354_v17, %v362_v0 }
  0xbf   :  { %527 = vlog2.f32 %v307_v44  ;;  %v526_v50 = vpop.eup %525  ;;  %v320_v57 = vmul.f32 0.6931472, %v524_v46 }
  0xc0   :  { %529 = vlog2.f32 %v283_v45  ;;  %v296_v58 = vmul.f32 0.6931472, %v526_v50  ;;  %v329_v61 = vsub.f32 %v294_v53, %v318_v52 }
  0xc1   :  { %531 = vlog2.f32 %v308_v49 }
  0xc2   :  { %v330_v9 = vsub.f32 %v296_v58, %v320_v57  ;;  %v337_v2 = vsel %vm273_vm4, %v329_v61, 0.0 }
  0xc3   :  { %v355_v19 = vperm.slane %v337_v2, %v350_v59 }
  0xc4   :  { %v268_v62 = vpop.xlane.xlu0 %267  ;;  %v338_v10 = vsel %vm274_vm5, %v330_v9, 0.0 }
  0xc5   :  { %v528_v63 = vpop.eup %527  ;;  %v284_v3 = vsel %vm276_vm6, %v268_v62, 1.0  ;;  %v356_v7 = vperm.slane %v338_v10, %v350_v59  ;;  %v366_v28 = vsel %vm365_vm11, %v355_v19, %v364_v25 }
  0xc6   :  { %v530_v4 = vpop.eup %529  ;;  %v322_v8 = vmul.f32 0.6931472, %v528_v63  ;;  %533 = vlog2.f32 %v284_v3 }
  0xc7   :  { %v298_v11 = vmul.f32 0.6931472, %v530_v4  ;;  %v532_v12 = vpop.eup %531  ;;  %v368_v31 = vsel %vm367_vm12, %v356_v7, %v366_v28 }
  0xc8   :  { %v324_v21 = vmul.f32 0.6931472, %v532_v12 }
  0xc9   :  { %v331_v15 = vsub.f32 %v298_v11, %v322_v8 }
  0xcb   :  { %v339_v23 = vsel %vm275_vm7, %v331_v15, 0.0 }
  0xcc   :  { %v534_v22 = vpop.eup %533  ;;  %v357_v26 = vperm.slane %v339_v23, %v350_v59 }
  0xcd   :  { %v300_v24 = vmul.f32 0.6931472, %v534_v22 }
  0xce   :  { %v370_v32 = vsel %vm369_vm13, %v357_v26, %v368_v31 }
  0xcf   :  { %v332_v27 = vsub.f32 %v300_v24, %v324_v21 }
  0xd1   :  { %v340_v29 = vsel %vm276_vm6, %v332_v27, 0.0 }
  0xd2   :  { %v358_v20 = vperm.slane %v340_v29, %v350_v59 }
  0xd4   :  { %v372_v33 = vsel %vm371_vm14, %v358_v20, %v370_v32 }
  0xd5   :  { %v374_v35 = vmul.f32 %v372_v33, %v164_v30 }
  0xd7   :  { %v376_v36 = vsel %vm375_vm15, %v374_v35, 0.0 }
  0xd8   :  { %377 = vadd.xlane.f32.xlu1 %v376_v36 }
 0x14b   :  { %v378_v37 = vpop.xlane.xlu1 %377 }
 0x14c   :  { %v379_v38 = vrot.slane %v378_v37, 4 }
 0x14e   :  { %v380_v39 = vadd.f32 %v379_v38, %v378_v37 }
 0x150   :  { %v381_v40 = vrot.slane %v380_v39, 2 }
 0x152   :  { %v382_v41 = vadd.f32 %v381_v40, %v380_v39 }
 0x154   :  { %v383_v42 = vrot.slane %v382_v41, 1 }
 0x156   :  { %v384_v43 = vadd.f32 %v383_v42, %v382_v41 }
 0x158   :  { %494 = vpush %v384_v43 }
 0x189   :  { %s495_s7 = spop %494 }
 0x18a   :  { %v387_v34 = vstv %s495_s7 }
 0x18b   :  { %389 = vst.msk [vmem:[#allocation11] sm:$0x1] %vm388_vm0, %v387_v34 }
 0x18c   :  { %400 = dma.vmem_to_hbm [thread:$0]  %s396_s30, 16, %s398_s6, [#allocation7]  }
 0x18d   :  { %649 = dma.done.wait [#allocation7], 16  }
 0x18e   :  { %650 = vsyncadd [#allocation7], 4294967280 }
 0x18f   :  { %405 = vsyncpa [#allocation6], 1 }
 0x190   :  { %406 = vsyncpa [#allocation9], 1 }
 0x191   :  { %407 = vsyncpa [#allocation7], 1 }

</bundles_post_ra>
